<compile_context>
chip_gen: v5e
topology: v5e:2x2
jax: 0.10.0
libtpu: 0.0.40
codegen_flags: <defaults>
</compile_context>

<pallas_src>
import jax
import jax.numpy as jnp
from jax.experimental import pallas as pl
from jax.experimental.pallas import tpu as pltpu


def _round_up(x, m):
    return (x + m - 1) // m * m


def mlp_head_kernel(x_ref, w1_ref, gamma_ref, beta_ref, w2_ref, b2_ref,
                    o_ref, acc_ref):
    # grid = (k over C_hid tiles,)  -- reduction axis, "arbitrary"
    k = pl.program_id(0)
    nk = pl.num_programs(0)

    @pl.when(k == 0)
    def _():
        acc_ref[...] = jnp.zeros_like(acc_ref)

    # ----- Linear 1 (MXU, bf16 operands, f32 accumulation) -----
    # b1 omitted: the train-mode BatchNorm below subtracts the batch mean,
    # so a constant per-feature bias cancels exactly in the forward output.
    h = jnp.dot(x_ref[...], w1_ref[...], preferred_element_type=jnp.float32)

    # ----- BatchNorm1d, training mode (batch stats, biased var, eps=1e-5) -----
    # Fused into a single per-feature scale/shift; all math in f32.
    # TODO(synk): running_mean / running_var buffer updates (training-side
    # state) are not reproduced; only the normalized forward output is computed.
    mean = jnp.mean(h, axis=0, keepdims=True)                # (1, TK)
    centered = h - mean
    var = jnp.mean(centered * centered, axis=0, keepdims=True)
    scale = gamma_ref[...] * jax.lax.rsqrt(var + 1e-5)       # (1, TK)
    shift = beta_ref[...] - mean * scale                     # (1, TK)

    # ----- BN affine + ReLU (VPU) -----
    h = jnp.maximum(h * scale + shift, 0.0)

    # ----- Linear 2 (MXU, bf16 operands), accumulated over C_hid tiles -----
    acc_ref[...] += jnp.dot(h.astype(jnp.bfloat16), w2_ref[...],
                            preferred_element_type=jnp.float32)

    @pl.when(k == nk - 1)
    def _():
        o_ref[...] = (acc_ref[...] + b2_ref[...]).astype(o_ref.dtype)


def mlp_head(x, w1, b1, gamma, beta, w2, b2, *, tk=512):
    # b1 accepted for module/interface parity but unused: exactly cancelled by
    # the train-mode BatchNorm that follows Linear 1.
    del b1
    B, C_in = x.shape
    C_hid = w1.shape[1]
    C_proj = w2.shape[1]
    out_dtype = x.dtype

    # Lane-dense padding of feature axes (multiples of 128 / tk). Padded weight
    # columns/rows, gamma, beta and b2 are zero, so padded features contribute 0.
    tk = max(128, _round_up(tk, 128))
    tk = min(tk, _round_up(C_hid, 128))
    C_hid_p = _round_up(C_hid, tk)
    C_proj_p = _round_up(C_proj, 128)

    x_b = x.astype(jnp.bfloat16)
    w1_p = jnp.pad(w1, ((0, 0), (0, C_hid_p - C_hid))).astype(jnp.bfloat16)
    gamma_p = jnp.pad(gamma, ((0, 0), (0, C_hid_p - C_hid))).astype(jnp.float32)
    beta_p = jnp.pad(beta, ((0, 0), (0, C_hid_p - C_hid))).astype(jnp.float32)
    w2_p = jnp.pad(w2, ((0, C_hid_p - C_hid),
                        (0, C_proj_p - C_proj))).astype(jnp.bfloat16)
    b2_p = jnp.pad(b2, ((0, 0), (0, C_proj_p - C_proj))).astype(jnp.float32)

    nk = C_hid_p // tk

    # VMEM budget: double-buffered input/output tiles + full-width f32
    # accumulator, with headroom; clamped so the plan fits v7x's smaller VMEM.
    out_itemsize = jnp.dtype(out_dtype).itemsize
    vmem_est = (2 * (B * C_in * 2)                 # x (bf16, resident)
                + 2 * (C_in * tk * 2)              # w1 tile (bf16)
                + 2 * (2 * tk * 4)                 # gamma + beta tiles (f32)
                + 2 * (tk * C_proj_p * 2)          # w2 tile (bf16)
                + 2 * (C_proj_p * 4)               # b2 (f32)
                + 2 * (B * C_proj_p * out_itemsize)  # output block
                + B * C_proj_p * 4)                # f32 accumulator scratch
    vmem_limit = int(min(max(2 * vmem_est, 16 * 1024 * 1024), 48 * 1024 * 1024))

    cost = pl.CostEstimate(
        flops=int(2 * B * C_hid_p * (C_in + C_proj_p)),
        transcendentals=int(C_hid_p),              # one rsqrt per hidden feature
        bytes_accessed=int(x_b.size * 2 + w1_p.size * 2 + w2_p.size * 2
                           + (gamma_p.size + beta_p.size + b2_p.size) * 4
                           + B * C_proj_p * out_itemsize),
    )

    grid_spec = pltpu.PrefetchScalarGridSpec(
        num_scalar_prefetch=0,
        grid=(nk,),
        in_specs=[
            pl.BlockSpec((B, C_in), lambda k: (0, 0)),        # x (full batch, resident)
            pl.BlockSpec((C_in, tk), lambda k: (0, k)),       # w1 column tile
            pl.BlockSpec((1, tk), lambda k: (0, k)),          # gamma tile
            pl.BlockSpec((1, tk), lambda k: (0, k)),          # beta tile
            pl.BlockSpec((tk, C_proj_p), lambda k: (k, 0)),   # w2 row tile
            pl.BlockSpec((1, C_proj_p), lambda k: (0, 0)),    # b2 (full, resident)
        ],
        out_specs=pl.BlockSpec((B, C_proj_p), lambda k: (0, 0)),
        scratch_shapes=[pltpu.VMEM((B, C_proj_p), jnp.float32)],
    )

    out_padded = pl.pallas_call(
        mlp_head_kernel,
        out_shape=jax.ShapeDtypeStruct((B, C_proj_p), out_dtype),
        grid_spec=grid_spec,
        compiler_params=pltpu.CompilerParams(
            dimension_semantics=("arbitrary",),
            vmem_limit_bytes=vmem_limit),
        cost_estimate=cost,
    )(x_b, w1_p, gamma_p, beta_p, w2_p, b2_p)

    return out_padded[:, :C_proj]


def init_params(key, in_channels, mlp_hidden_size, projection_size):
    """Deterministic init mirroring nn.Linear default (U[-1/sqrt(fan_in), ...])
    and nn.BatchNorm1d default (gamma=1, beta=0)."""
    k1, k2, k3, k4 = jax.random.split(key, 4)
    bound1 = 1.0 / (in_channels ** 0.5)
    w1 = jax.random.uniform(k1, (in_channels, mlp_hidden_size),
                            jnp.float32, -bound1, bound1)
    b1 = jax.random.uniform(k2, (1, mlp_hidden_size),
                            jnp.float32, -bound1, bound1)
    gamma = jnp.ones((1, mlp_hidden_size), jnp.float32)
    beta = jnp.zeros((1, mlp_hidden_size), jnp.float32)
    bound2 = 1.0 / (mlp_hidden_size ** 0.5)
    w2 = jax.random.uniform(k3, (mlp_hidden_size, projection_size),
                            jnp.float32, -bound2, bound2)
    b2 = jax.random.uniform(k4, (1, projection_size),
                            jnp.float32, -bound2, bound2)
    return w1, b1, gamma, beta, w2, b2


if __name__ == "__main__":
    # Small shapes that still exercise padding (C_in/C_proj not 128-aligned)
    # and a multi-step C_hid reduction (256 -> 2 grid steps of tk=128).
    B = 8
    in_channels = 96
    mlp_hidden_size = 256
    projection_size = 96

    key = jax.random.PRNGKey(0)
    kx, kp = jax.random.split(key)
    x = jax.random.normal(kx, (B, in_channels), jnp.float32)
    w1, b1, gamma, beta, w2, b2 = init_params(
        kp, in_channels, mlp_hidden_size, projection_size)

    out = mlp_head(x, w1, b1, gamma, beta, w2, b2, tk=128)
    jax.block_until_ready(out)

    # Reference 1: precision-matched (bf16 matmul operands, f32 accum; b1 kept
    # since train-mode BN cancels it exactly).
    xb = x.astype(jnp.bfloat16)
    w1b = w1.astype(jnp.bfloat16)
    w2b = w2.astype(jnp.bfloat16)
    h = jnp.dot(xb, w1b, preferred_element_type=jnp.float32) + b1
    mean = h.mean(axis=0, keepdims=True)
    var = ((h - mean) ** 2).mean(axis=0, keepdims=True)
    h = (h - mean) * jax.lax.rsqrt(var + 1e-5) * gamma + beta
    h = jnp.maximum(h, 0.0)
    ref_bf16 = jnp.dot(h.astype(jnp.bfloat16), w2b,
                       preferred_element_type=jnp.float32) + b2
    assert jnp.allclose(out, ref_bf16, atol=2e-3, rtol=2e-3), (
        float(jnp.max(jnp.abs(out - ref_bf16))))

    # Reference 2: full-f32 module semantics (looser tol due to bf16 MXU ops).
    h32 = x @ w1 + b1
    mean32 = h32.mean(axis=0, keepdims=True)
    var32 = ((h32 - mean32) ** 2).mean(axis=0, keepdims=True)
    h32 = (h32 - mean32) / jnp.sqrt(var32 + 1e-5) * gamma + beta
    h32 = jnp.maximum(h32, 0.0)
    ref_f32 = h32 @ w2 + b2
    assert jnp.allclose(out, ref_f32, atol=2e-2, rtol=2e-2), (
        float(jnp.max(jnp.abs(out - ref_f32))))

    print("KERNEL_OK")
</pallas_src>

<mosaic_0001>
module attributes {stable_mosaic.version = 11 : i64} {
  func.func @mlp_head_kernel(%arg0: i32, %arg1: memref<8x96xbf16, #tpu.memory_space<vmem>>, %arg2: memref<96x128xbf16, #tpu.memory_space<vmem>>, %arg3: memref<1x128xf32, #tpu.memory_space<vmem>>, %arg4: memref<1x128xf32, #tpu.memory_space<vmem>>, %arg5: memref<128x128xbf16, #tpu.memory_space<vmem>>, %arg6: memref<1x128xf32, #tpu.memory_space<vmem>>, %arg7: memref<8x128xf32, #tpu.memory_space<vmem>>, %arg8: memref<8x128xf32, #tpu.memory_space<vmem>>) attributes {dimension_semantics = [#tpu.dimension_semantics<arbitrary>], iteration_bounds = array<i64: 2>, scalar_prefetch = 0 : i64, scratch_operands = 1 : i64, tpu.core_type = #tpu.core_type<tc>, window_params = [{pipeline_mode = #tpu.pipeline_mode<synchronous>, transform_indices = @transform_0, window_bounds = array<i64: 8, 96>}, {transform_indices = @transform_1, window_bounds = array<i64: 96, 128>}, {transform_indices = @transform_2, window_bounds = array<i64: 1, 128>}, {transform_indices = @transform_3, window_bounds = array<i64: 1, 128>}, {transform_indices = @transform_4, window_bounds = array<i64: 128, 128>}, {pipeline_mode = #tpu.pipeline_mode<synchronous>, transform_indices = @transform_5, window_bounds = array<i64: 1, 128>}, {pipeline_mode = #tpu.pipeline_mode<synchronous>, transform_indices = @transform_6, window_bounds = array<i64: 8, 128>}]} {
    %c0_i32 = arith.constant 0 : i32
    %0 = arith.cmpi eq, %arg0, %c0_i32 : i32
    %1 = arith.extui %0 : i1 to i32
    %c0_i32_0 = arith.constant 0 : i32
    %2 = arith.cmpi ne, %1, %c0_i32_0 : i32
    scf.if %2 {
      %cst_22 = arith.constant 0.000000e+00 : f32
      %40 = vector.broadcast %cst_22 : f32 to vector<8x128xf32>
      %c0_23 = arith.constant 0 : index
      %c0_24 = arith.constant 0 : index
      %41 = vector.load %arg8[%c0_23, %c0_24] : memref<8x128xf32, #tpu.memory_space<vmem>>, vector<8x128xf32>
      tpu.vector_store %arg8[%c0_23, %c0_24], %40 {strides = array<i32>} : memref<8x128xf32, #tpu.memory_space<vmem>>, vector<8x128xf32>,
    } else {
    }
    %c0 = arith.constant 0 : index
    %c0_1 = arith.constant 0 : index
    %3 = vector.load %arg1[%c0, %c0_1] : memref<8x96xbf16, #tpu.memory_space<vmem>>, vector<8x96xbf16>
    %c0_2 = arith.constant 0 : index
    %c0_3 = arith.constant 0 : index
    %4 = vector.load %arg2[%c0_2, %c0_3] : memref<96x128xbf16, #tpu.memory_space<vmem>>, vector<96x128xbf16>
    %cst = arith.constant dense<0.000000e+00> : vector<8x128xf32>
    %5 = tpu.matmul %3, %4, %cst {dimension_numbers = #tpu.dot_dimension_numbers<[1], [0], [0], [1], [0, 0, 1, 1], [], []>} : vector<8x96xbf16>, vector<96x128xbf16>, vector<8x128xf32> -> vector<8x128xf32>
    %cst_4 = arith.constant dense<0.000000e+00> : vector<128xf32>
    %6 = vector.multi_reduction <add>, %5, %cst_4 [0] : vector<8x128xf32> to vector<128xf32>
    %7 = vector.shape_cast %6 : vector<128xf32> to vector<1x128xf32>
    %cst_5 = arith.constant 8.000000e+00 : f32
    %8 = vector.broadcast %cst_5 : f32 to vector<1x128xf32>
    %9 = arith.divf %7, %8 : vector<1x128xf32>
    %10 = vector.broadcast %9 : vector<1x128xf32> to vector<8x128xf32>
    %11 = arith.subf %5, %10 : vector<8x128xf32>
    %12 = arith.mulf %11, %11 : vector<8x128xf32>
    %cst_6 = arith.constant dense<0.000000e+00> : vector<128xf32>
    %13 = vector.multi_reduction <add>, %12, %cst_6 [0] : vector<8x128xf32> to vector<128xf32>
    %14 = vector.shape_cast %13 : vector<128xf32> to vector<1x128xf32>
    %cst_7 = arith.constant 8.000000e+00 : f32
    %15 = vector.broadcast %cst_7 : f32 to vector<1x128xf32>
    %16 = arith.divf %14, %15 : vector<1x128xf32>
    %c0_8 = arith.constant 0 : index
    %c0_9 = arith.constant 0 : index
    %17 = vector.load %arg3[%c0_8, %c0_9] : memref<1x128xf32, #tpu.memory_space<vmem>>, vector<1x128xf32>
    %cst_10 = arith.constant 9.99999974E-6 : f32
    %18 = vector.broadcast %cst_10 : f32 to vector<1x128xf32>
    %19 = arith.addf %16, %18 : vector<1x128xf32>
    %20 = math.rsqrt %19 : vector<1x128xf32>
    %21 = arith.mulf %17, %20 : vector<1x128xf32>
    %c0_11 = arith.constant 0 : index
    %c0_12 = arith.constant 0 : index
    %22 = vector.load %arg4[%c0_11, %c0_12] : memref<1x128xf32, #tpu.memory_space<vmem>>, vector<1x128xf32>
    %23 = arith.mulf %9, %21 : vector<1x128xf32>
    %24 = arith.subf %22, %23 : vector<1x128xf32>
    %25 = vector.broadcast %21 : vector<1x128xf32> to vector<8x128xf32>
    %26 = arith.mulf %5, %25 : vector<8x128xf32>
    %27 = vector.broadcast %24 : vector<1x128xf32> to vector<8x128xf32>
    %28 = arith.addf %26, %27 : vector<8x128xf32>
    %cst_13 = arith.constant 0.000000e+00 : f32
    %29 = vector.broadcast %cst_13 : f32 to vector<8x128xf32>
    %30 = arith.maximumf %28, %29 : vector<8x128xf32>
    %c0_14 = arith.constant 0 : index
    %c0_15 = arith.constant 0 : index
    %31 = vector.load %arg8[%c0_14, %c0_15] : memref<8x128xf32, #tpu.memory_space<vmem>>, vector<8x128xf32>
    %32 = arith.truncf %30 : vector<8x128xf32> to vector<8x128xbf16>
    %c0_16 = arith.constant 0 : index
    %c0_17 = arith.constant 0 : index
    %33 = vector.load %arg5[%c0_16, %c0_17] : memref<128x128xbf16, #tpu.memory_space<vmem>>, vector<128x128xbf16>
    %cst_18 = arith.constant dense<0.000000e+00> : vector<8x128xf32>
    %34 = tpu.matmul %32, %33, %cst_18 {dimension_numbers = #tpu.dot_dimension_numbers<[1], [0], [0], [1], [0, 0, 1, 1], [], []>} : vector<8x128xbf16>, vector<128x128xbf16>, vector<8x128xf32> -> vector<8x128xf32>
    %35 = arith.addf %31, %34 : vector<8x128xf32>
    %c0_19 = arith.constant 0 : index
    %c0_20 = arith.constant 0 : index
    %36 = vector.load %arg8[%c0_19, %c0_20] : memref<8x128xf32, #tpu.memory_space<vmem>>, vector<8x128xf32>
    tpu.vector_store %arg8[%c0_19, %c0_20], %35 {strides = array<i32>} : memref<8x128xf32, #tpu.memory_space<vmem>>, vector<8x128xf32>,
    %c1_i32 = arith.constant 1 : i32
    %37 = arith.cmpi eq, %arg0, %c1_i32 : i32
    %38 = arith.extui %37 : i1 to i32
    %c0_i32_21 = arith.constant 0 : i32
    %39 = arith.cmpi ne, %38, %c0_i32_21 : i32
    scf.if %39 {
      %c0_22 = arith.constant 0 : index
      %c0_23 = arith.constant 0 : index
      %40 = vector.load %arg8[%c0_22, %c0_23] : memref<8x128xf32, #tpu.memory_space<vmem>>, vector<8x128xf32>
      %c0_24 = arith.constant 0 : index
      %c0_25 = arith.constant 0 : index
      %41 = vector.load %arg6[%c0_24, %c0_25] : memref<1x128xf32, #tpu.memory_space<vmem>>, vector<1x128xf32>
      %42 = vector.broadcast %41 : vector<1x128xf32> to vector<8x128xf32>
      %43 = arith.addf %40, %42 : vector<8x128xf32>
      %c0_26 = arith.constant 0 : index
      %c0_27 = arith.constant 0 : index
      %44 = vector.load %arg7[%c0_26, %c0_27] : memref<8x128xf32, #tpu.memory_space<vmem>>, vector<8x128xf32>
      tpu.vector_store %arg7[%c0_26, %c0_27], %43 {strides = array<i32>} : memref<8x128xf32, #tpu.memory_space<vmem>>, vector<8x128xf32>,
    } else {
    }
    return
  }
  func.func @transform_0(%arg0: i32) -> (i32, i32) {
    %c0_i32 = arith.constant 0 : i32
    %c0_i32_0 = arith.constant 0 : i32
    %c0_i32_1 = arith.constant 0 : i32
    return %c0_i32, %c0_i32_0 : i32, i32
  }
  func.func @transform_1(%arg0: i32) -> (i32, i32) {
    %c0_i32 = arith.constant 0 : i32
    %c0_i32_0 = arith.constant 0 : i32
    return %c0_i32, %arg0 : i32, i32
  }
  func.func @transform_2(%arg0: i32) -> (i32, i32) {
    %c0_i32 = arith.constant 0 : i32
    %c0_i32_0 = arith.constant 0 : i32
    return %c0_i32, %arg0 : i32, i32
  }
  func.func @transform_3(%arg0: i32) -> (i32, i32) {
    %c0_i32 = arith.constant 0 : i32
    %c0_i32_0 = arith.constant 0 : i32
    return %c0_i32, %arg0 : i32, i32
  }
  func.func @transform_4(%arg0: i32) -> (i32, i32) {
    %c0_i32 = arith.constant 0 : i32
    %c0_i32_0 = arith.constant 0 : i32
    return %arg0, %c0_i32 : i32, i32
  }
  func.func @transform_5(%arg0: i32) -> (i32, i32) {
    %c0_i32 = arith.constant 0 : i32
    %c0_i32_0 = arith.constant 0 : i32
    %c0_i32_1 = arith.constant 0 : i32
    return %c0_i32, %c0_i32_0 : i32, i32
  }
  func.func @transform_6(%arg0: i32) -> (i32, i32) {
    %c0_i32 = arith.constant 0 : i32
    %c0_i32_0 = arith.constant 0 : i32
    %c0_i32_1 = arith.constant 0 : i32
    return %c0_i32, %c0_i32_0 : i32, i32
  }
}

</mosaic_0001>

<bundles_post_ra>
// kernel: tpu_custom_call.1
= control target key start
LH: loop header
LB: loop body
LE: loop exit
PB: predicated region body
PF: predicated region fallthrough
CT: control target
= control target key end

     0   :  { %11 = vsyncpa [#allocation4], 0  ;;  %s1297_s0 = inlined_call_operand.hbm [shape: bf16[8,96], index: 0, kind: input, shape index: {}]   ;;  %s1298_s1 = inlined_call_operand.hbm [shape: bf16[96,256], index: 1, kind: input, shape index: {}]   ;;  %s1299_s2 = inlined_call_operand.hbm [shape: f32[1,256], index: 2, kind: input, shape index: {}]   ;;  %s1300_s3 = inlined_call_operand.vmem [shape: f32[1,256], index: 3, kind: input, shape index: {}]   ;;  %s1301_s4 = inlined_call_operand.hbm [shape: bf16[256,128], index: 4, kind: input, shape index: {}]   ;;  %s1302_s5 = inlined_call_operand.vmem [shape: f32[1,128], index: 5, kind: input, shape index: {}]   ;;  %s1303_s6 = inlined_call_operand.hbm [shape: f32[8,128], index: 6, kind: output, shape index: {}]  }
   0x1   :  { %12 = vsyncpa [#allocation7], 0 }
   0x2   :  { %14 = vsyncpa [#allocation7 + $0x1], 0 }
   0x3   :  { %15 = vsyncpa [#allocation10], 0 }
   0x4   :  { %17 = vsyncpa [#allocation10 + $0x1], 0 }
   0x5   :  { %18 = vsyncpa [#allocation5], 0  ;;  %s1100_s21 = smov 0   ;;  %s1102_s22 = smov 0  }
   0x6   :  { %s1104_s23 = smov 0   ;;  %s1106_s24 = smov 0  }
   0x7 LB: > { %s1121_s25 = sadd.s32 1, %s1056_s24   ;;  %s52_s26 = sadd.s32 1, %s1052_s23  ;;  %s1056_s24 = sphi %s1106_s24, %s1314_s24   ;;  %s1052_s23 = sphi %s1104_s23, %s1313_s23   ;;  %s1048_s22 = sphi %s1102_s22, %s1312_s22   ;;  %s1044_s21 = sphi %s1100_s21, %s1311_s21  }
   0x8   : > { %s49_s27 = ssub.s32 %s1056_s24, %s1121_s25  ;;  %p59_p0 = scmp.ne.s32.totalorder %s1052_s23, %s1048_s22 }
   0x9   : > { %p50_p1 = scmp.eq.s32.totalorder %s49_s27, 0  ;;  %p60_p2 = scmp.eq.s32.totalorder %s1056_s24, 0 }
   0xa   : > { %p814_p3 = scmp.lt.s32.totalorder %s1056_s24, 2  ;;  %s224_s29 = sand.u32 1, %s1056_s24  }
   0xb   : > { %s1131_s28 = scalar_select %p50_p1, %s1052_s23, %s52_s26  }
   0xc   : > { %p61_p4 = por %p60_p2, %p59_p0  ;;  %s1135_s30 = sand.u32 1, %s1052_s23  }
   0xd   : > { %s783_s7 = smul.u32 48, %s1135_s30  ;;  %s698_s8 = sshll.u32 %s1056_s24, 2 }
   0xe   : > { %s232_s11 = scalar_lea.hbm %s1298_s1, %s698_s8  ;;  %p1142_p5 = pnand %p814_p3, %p61_p4 }
   0xf   : > { %s233_s13 = sshll.u32 %s232_s11, 4  ;;  %s228_s14 = scalar_lea.vmem [#allocation6], %s783_s7  ;;  %s234_s13 = int_to_ptr.hbm [resolvable:$true] %s233_s13 }
  0x10   : > { %s235_s15 = sshll.u32 %s228_s14, 4  ;;  %s1146_s16 = scalar_lea.sflag [#allocation7], %s224_s29  ;;  %s236_s15 = int_to_ptr.vmem [resolvable:$true] %s235_s15 }
  0x11   : > { %s862_s17 = sshra.s32 %s234_s13, 4  ;;  %p866_p7 = pneg %p1142_p5  ;;  %s863_s17 = int_to_ptr.hbm [resolvable:$true] %s862_s17 }
  0x12   : > { %s864_s18 = scalar_lea.hbm %s863_s17, 48  ;;  %s869_s26 = scalar_lea.hbm %s1298_s1, 96 }
  0x13   : > { %p865_p6 = scmp.ne.s32.totalorder %s863_s17, %s864_s18  ;;  %p870_p10 = scmp.lt.s32.totalorder %s863_s17, %s1298_s1 }
  0x14   : > { %p871_p11 = scmp.lt.s32.totalorder %s869_s26, %s864_s18 }
  0x15   : > { %p867_p8 = pnand %p866_p7, %p865_p6 }
  0x16   : > { %p872_p12 = por %p871_p11, %p870_p10 }
  0x17   : > { %p868_p9 = pneg %p867_p8 }
  0x19   : > { %p873_p13 = pnand %p872_p12, %p868_p9 }
  0x1b   : > { %876 = shalt.err (!%p873_p13)
}
  0x1c   : > { %s1058_s29 = smov 128   ;;  %s1304_s8 = smov 64  }
  0x1d   : > { %s1305_s9 = smov 4   ;;  %s1165_s10 = sadd.s32 4294967295, %s1056_s24  }
  0x1e   : > { %806 = dma.hbm_to_vmem [thread:$0]  (!%p1142_p5), %s234_s13, 768, %s236_s15, %s1146_s16, %s1058_s29, %s1304_s8, %s1305_s9  }
  0x1f   : > { %p65_p0 = scmp.ne.s32.totalorder %s1048_s22, %s1044_s21  ;;  %p66_p1 = scmp.eq.s32.totalorder %s1165_s10, 0 }
  0x20   : > { %p695_p2 = scmp.ge.s32.totalorder %s1056_s24, 1  ;;  %p196_p3 = scmp.lt.s32.totalorder %s1056_s24, 3 }
  0x21   : > { %p1174_p4 = por %p66_p1, %p65_p0  ;;  %p696_p6 = scmp.ne.s32.totalorder %s1165_s10, 0 }
  0x22   : > { %p1179_p8 = pnand %p695_p2, %p196_p3  ;;  %s208_s17 = sshll.u32 %s1297_s0, 4  ;;  %s209_s17 = int_to_ptr.hbm [resolvable:$true] %s208_s17 }
  0x23   : > { %s1061_s21 = smov [#allocation3]   ;;  %s251_s26 = scalar_lea.hbm %s1299_s2, %s1056_s24 }
  0x24   : > { %p799_p9 = pneg %p1179_p8  ;;  %s210_s18 = sshll.u32 %s1061_s21, 4  ;;  %s211_s18 = int_to_ptr.vmem [resolvable:$true] %s210_s18 }
  0x25   : > { %s253_s27 = sshll.u32 %s251_s26, 4  ;;  %s248_s7 = scalar_lea.vmem [#allocation8], %s1135_s30  ;;  %s254_s27 = int_to_ptr.hbm [resolvable:$true] %s253_s27 }
  0x26   : > { %p800_p10 = pnand %p799_p9, %p66_p1  ;;  %s255_s29 = sshll.u32 %s248_s7, 4  ;;  %s256_s29 = int_to_ptr.vmem [resolvable:$true] %s255_s29 }
  0x27   : > { %s922_s14 = sshra.s32 %s254_s27, 4  ;;  %s929_s9 = scalar_lea.hbm %s1299_s2, 2  ;;  %s923_s14 = int_to_ptr.hbm [resolvable:$true] %s922_s14 }
  0x28   : > { %802 = dma.hbm_to_vmem [thread:$0]  (!%p800_p10), %s209_s17, 64, %s211_s18, [#allocation4]  }
  0x29   : > { %s924_s15 = scalar_lea.hbm %s923_s14, 1  ;;  %p930_p0 = scmp.lt.s32.totalorder %s923_s14, %s1299_s2 }
  0x2a   : > { %p925_p11 = scmp.ne.s32.totalorder %s923_s14, %s924_s15  ;;  %p931_p2 = scmp.lt.s32.totalorder %s929_s9, %s924_s15 }
  0x2c   : > { %p927_p12 = pnand %p925_p11, %p866_p7  ;;  %p932_p3 = por %p931_p2, %p930_p0 }
  0x2e   : > { %p928_p13 = pneg %p927_p12 }
  0x30   : > { %p933_p9 = pnand %p932_p3, %p928_p13 }
  0x32   : > { %936 = shalt.err (!%p933_p9)
}
  0x33   : > { %809 = dma.hbm_to_vmem [thread:$0]  (!%p1142_p5), %s254_s27, 16, %s256_s29, %s1146_s16  }
  0x34   : > { %s699_s17 = sshll.u32 %s1135_s30, 6  ;;  %s768_s18 = sshll.u32 %s1056_s24, 6 }
  0x35   : > { %s277_s7 = scalar_lea.hbm %s1301_s4, %s768_s18  ;;  %s272_s14 = scalar_lea.vmem [#allocation9], %s699_s17 }
  0x36   : > { %s278_s21 = sshll.u32 %s277_s7, 4  ;;  %s280_s9 = sshll.u32 %s272_s14, 4  ;;  %s279_s21 = int_to_ptr.hbm [resolvable:$true] %s278_s21  ;;  %s281_s9 = int_to_ptr.vmem [resolvable:$true] %s280_s9 }
  0x37   : > { %s269_s15 = scalar_lea.sflag [#allocation10], %s1135_s30  ;;  %s952_s19 = sshra.s32 %s279_s21, 4  ;;  %s953_s19 = int_to_ptr.hbm [resolvable:$true] %s952_s19 }
  0x38   : > { %s954_s20 = scalar_lea.hbm %s953_s19, 64  ;;  %s959_s27 = scalar_lea.hbm %s1301_s4, 128 }
  0x39   : > { %p955_p10 = scmp.ne.s32.totalorder %s953_s19, %s954_s20  ;;  %p960_p13 = scmp.lt.s32.totalorder %s953_s19, %s1301_s4 }
  0x3a   : > { %p961_p0 = scmp.lt.s32.totalorder %s959_s27, %s954_s20 }
  0x3b   : > { %p957_p11 = pnand %p955_p10, %p866_p7 }
  0x3c   : > { %p962_p2 = por %p961_p0, %p960_p13 }
  0x3d   : > { %p958_p12 = pneg %p957_p11 }
  0x3f   : > { %p963_p3 = pnand %p962_p2, %p958_p12 }
  0x41   : > { %966 = shalt.err (!%p963_p3)
}
  0x42   : > { %s1309_s30 = smov 4   ;;  %s1310_s17 = smov 64  }
  0x43   : > { %812 = dma.hbm_to_vmem [thread:$0]  (!%p1142_p5), %s279_s21, 1024, %s281_s9, %s269_s15, %s1310_s17, %s1310_s17, %s1309_s30  }
  0x44   : > { %292 = sbr.rel (%p1179_p8) target bundleno = 449 (0x1c1), region = 44 }
  0x49   : > { %1027 = dma.done.wait (%p66_p1), [#allocation4], 64  }
  0x4a   : > { %1029 = vsyncadd (%p66_p1), [#allocation4], 4294967232  ;;  %s299_s8 = sand.u32 1, %s1165_s10   ;;  %s1235_s26 = sand.u32 1, %s1048_s22  }
  0x4b   : > { %s784_s12 = smul.u32 48, %s1235_s26  ;;  %s300_s7 = scalar_lea.sflag [#allocation7], %s299_s8 }
  0x4d   : > { %s303_s14 = scalar_lea.vmem [#allocation6], %s784_s12 }
  0x4e   : > { %1031 = dma.done.wait (%p1174_p4), %s300_s7, 784  }
  0x4f   : > { %1033 = vsyncadd (%p1174_p4), %s300_s7, 4294966512  ;;  %s704_s13 = sshll.u32 %s1235_s26, 6  ;;  %s312_s21 = scalar_lea.vmem [#allocation8], %s1235_s26 }
  0x50   : > { %s319_s9 = scalar_lea.sflag [#allocation10], %s1235_s26  ;;  %s1245_s15 = scalar_lea.vmem [#allocation9], %s704_s13 }
  0x51   : > { %1035 = dma.done.wait (%p1174_p4), %s319_s9, 1024  }
  0x52   : > { %1037 = vsyncadd (%p1174_p4), %s319_s9, 4294966272  ;;  %p359_p5 = scmp.lt.s32.totalorder %s1165_s10, 1  ;;  %367 = sbr.rel (%p696_p6) target bundleno = 89 (0x59), region = 64 }
  0x54   : > { %s1253_s19 = scalar_select %p359_p5, %s1165_s10, 1 }
  0x56   : > { %s361_s24 = scalar_lea.vmem %s1300_s3, %s1253_s19 }
  0x57   : > { %v1062_v0 = vmov 0.0  }
  0x58   : > { %368 = vst [vmem:[#allocation2] sm:$0xff] %v1062_v0 }
  0x59 PF: > { %v774_v1 = vld [vmem:[%s303_s14 + $0x28] sm:$0xff]  ;;  %v773_v2 = vld [vmem:[%s303_s14 + $0x20] sm:$0xff]  ;;  %v772_v3 = vld [vmem:[%s303_s14 + $0x18] sm:$0xff]  ;;  %vm418_vm0 = vcmask 785408   ;;  %v1063_v8 = vmov 8.0   ;;  %p763_p7 = scmp.ne.s32.totalorder %s1165_s10, 1 }
  0x5a   : > { %424 = vmatpush.bf16.msra.mxu0 %v774_v1  ;;  %v771_v4 = vld [vmem:[%s303_s14 + $0x10] sm:$0xff]  ;;  %v770_v5 = vld [vmem:[%s303_s14 + $0x8] sm:$0xff]  ;;  %v769_v6 = vld [vmem:[%s303_s14] sm:$0xff]  ;;  %857 = vrcp.f32 %v1063_v8 }
  0x5b   : > { %v369_v7 = vld [vmem:[#allocation3] sm:$0xf]  ;;  %v781_v19 = vld [vmem:[%s1245_s15 + $0x30] sm:$0xff]  ;;  %v780_v24 = vld [vmem:[%s1245_s15 + $0x28] sm:$0xff] }
  0x5c   : > { %v782_v15 = vld [vmem:[%s1245_s15 + $0x38] sm:$0xff]  ;;  %v779_v26 = vld [vmem:[%s1245_s15 + $0x20] sm:$0xff]  ;;  %v777_v32 = vld [vmem:[%s1245_s15 + $0x10] sm:$0xff] }
  0x5d   : > { %549 = vmatpush.bf16.msra.mxu1 %v782_v15  ;;  %v778_v29 = vld [vmem:[%s1245_s15 + $0x18] sm:$0xff]  ;;  %v776_v35 = vld [vmem:[%s1245_s15 + $0x8] sm:$0xff]  ;;  %v775_v38 = vld [vmem:[%s1245_s15] sm:$0xff] }
  0x5e   : > { %425 = vmatpush.bf16.msra.mxu0 %v773_v2  ;;  %v458_v47 = vld [vmem:[%s312_s21] sm:$0x1] }
  0x5f   : > { %v471_v51 = vld [vmem:[%s361_s24] sm:$0x1] }
  0x60   : > { %v858_v9 = vpop.eup %857  ;;  %v483_v60 = vld [vmem:[#allocation2] sm:$0xff] }
  0x61   : > { %v442_v10 = vmul.f32 8.0, %v858_v9  ;;  %vm446_vm1 = vweird.f32 %v858_v9  ;;  %550 = vmatpush.bf16.msra.mxu1 %v781_v19 }
  0x62   : > { %426 = vmatpush.bf16.msra.mxu0 %v772_v3 }
  0x63   : > { %v443_v11 = vsub.f32 1.0, %v442_v10 }
  0x65   : > { %v444_v14 = vmul.f32 %v858_v9, %v443_v11  ;;  %551 = vmatpush.bf16.msra.mxu1 %v780_v24 }
  0x66   : > { %427 = vmatpush.bf16.msra.mxu0 %v771_v4 }
  0x67   : > { %v445_v18 = vadd.f32 %v858_v9, %v444_v14 }
  0x69   : > { %v447_v23 = vsel %vm446_vm1, %v858_v9, %v445_v18  ;;  %552 = vmatpush.bf16.msra.mxu1 %v779_v26 }
  0x6a   : > { %428 = vmatpush.bf16.msra.mxu0 %v770_v5 }
  0x6d   : > { %553 = vmatpush.bf16.msra.mxu1 %v778_v29 }
  0x6e   : > { %429 = vmatpush.bf16.msra.mxu0 %v769_v6 }
  0x71   : > { %730 = vmatmul.msk.bf16.vlgmr.msra.gmra.mxu0 %vm418_vm0, %v369_v7  ;;  %554 = vmatpush.bf16.msra.mxu1 %v777_v32 }
  0x75   : > { %555 = vmatpush.bf16.msra.mxu1 %v776_v35 }
  0x79   : > { %556 = vmatpush.bf16.msra.mxu1 %v775_v38 }
  0xee   : > { %v431_v12 = vpop.f32.mrf.mxu0 }
  0xef   : > { %v435_v13 = vrot.slane %v431_v12, 4 }
  0xf1   : > { %v436_v16 = vadd.f32 %v435_v13, %v431_v12 }
  0xf3   : > { %v437_v17 = vrot.slane %v436_v16, 2 }
  0xf5   : > { %v438_v20 = vadd.f32 %v437_v17, %v436_v16 }
  0xf6   : > { %v433_v21 = vpop.f32.mrf.mxu0 }
  0xf7   : > { %v439_v22 = vrot.slane %v438_v20, 1 }
  0xf9   : > { %v440_v25 = vadd.f32 %v439_v22, %v438_v20 }
  0xfb   : > { %v448_v27 = vmul.f32 %v447_v23, %v440_v25 }
  0xfd   : > { %v449_v28 = vsub.f32 %v431_v12, %v448_v27 }
  0xff   : > { %v450_v30 = vmul.f32 %v449_v28, %v449_v28 }
 0x101   : > { %v451_v31 = vrot.slane %v450_v30, 4 }
 0x103   : > { %v452_v33 = vadd.f32 %v451_v31, %v450_v30 }
 0x105   : > { %v453_v34 = vrot.slane %v452_v33, 2 }
 0x107   : > { %v454_v36 = vadd.f32 %v453_v34, %v452_v33 }
 0x109   : > { %v455_v37 = vrot.slane %v454_v36, 1 }
 0x10b   : > { %v456_v39 = vadd.f32 %v455_v37, %v454_v36 }
 0x10d   : > { %v457_v40 = vmul.f32 %v456_v39, %v447_v23 }
 0x10f   : > { %v459_v41 = vadd.f32 1e-05, %v457_v40 }
 0x111   : > { %859 = vrsqrt.f32 %v459_v41  ;;  %vm466_vm3 = vweird.f32 %v459_v41 }
 0x117   : > { %v860_v42 = vpop.eup %859 }
 0x118   : > { %v461_v43 = vmul.f32 %v860_v42, %v459_v41  ;;  %vm467_vm2 = vweird.f32 %v860_v42 }
 0x119   : > { %vm468_vm4 = vmor %vm466_vm3, %vm467_vm2 }
 0x11a   : > { %v462_v44 = vmul.f32 %v860_v42, %v461_v43 }
 0x11c   : > { %v463_v45 = vmul.f32 0.5, %v462_v44 }
 0x11e   : > { %v464_v46 = vsub.f32 1.5, %v463_v45 }
 0x120   : > { %v465_v48 = vmul.f32 %v860_v42, %v464_v46 }
 0x122   : > { %v469_v49 = vsel %vm468_vm4, %v860_v42, %v465_v48 }
 0x123   : > { %v470_v50 = vmul.f32 %v469_v49, %v458_v47 }
 0x125   : > { %v472_v52 = vmul.f32 %v470_v50, %v448_v27  ;;  %v475_v53 = vperm.slane %v470_v50, 0 }
 0x127   : > { %v473_v54 = vsub.f32 %v471_v51, %v472_v52  ;;  %v477_v55 = vmul.f32 %v475_v53, %v431_v12 }
 0x129   : > { %v479_v56 = vperm.slane %v473_v54, 0 }
 0x12b   : > { %v481_v57 = vadd.f32 %v479_v56, %v477_v55 }
 0x12d   : > { %v482_v58 = vmax.f32 %v481_v57, 0.0 }
 0x12f   : > { %v484_v59 = vpack.c.bf16 %v482_v58, %v482_v58 }
 0x131   : > { %557 = vmatmul.bf16.vlgmr.msra.gmra.mxu1 %v484_v59 }
 0x1ae   : > { %v558_v61 = vpop.f32.mrf.mxu1 }
 0x1af   : > { %v562_v62 = vadd.f32 %v558_v61, %v483_v60 }
 0x1b1   : > { %563 = vst [vmem:[#allocation2] sm:$0xff] %v562_v62 }
 0x1b2   : > { %567 = sbr.rel (%p763_p7) target bundleno = 444 (0x1bc), region = 68 }
 0x1b6   : > { %v560_v63 = vpop.f32.mrf.mxu1 }
 0x1b7   : > { %v861_v1 = vld [vmem:[%s1302_s5] ss:$0 sm:$0xff] }
 0x1b8   : > { %v568_v0 = vld [vmem:[#allocation2] sm:$0xff] }
 0x1b9   : > { %v573_v2 = vadd.f32 %v861_v1, %v568_v0 }
 0x1bb   : > { %574 = vst [vmem:[#allocation11] sm:$0xff] %v573_v2 }
 0x1bc PF: > { %p816_p1 = scmp.eq.s32.totalorder %s1165_s10, 1  ;;  %s1064_s30 = smov [#allocation11]  }
 0x1bd   : > { %s581_s17 = sshll.u32 %s1064_s30, 4  ;;  %s583_s12 = sshll.u32 %s1303_s6, 4  ;;  %s582_s17 = int_to_ptr.vmem [resolvable:$true] %s581_s17  ;;  %s584_s12 = int_to_ptr.hbm [resolvable:$true] %s583_s12 }
 0x1be   : > { %796 = dma.vmem_to_hbm [thread:$0]  (%p816_p1), %s582_s17, 128, %s584_s12, [#allocation5]  }
 0x1bf   : > { %1039 = dma.done.wait (%p816_p1), [#allocation5], 128  }
 0x1c0   : > { %1041 = vsyncadd (%p816_p1), [#allocation5], 4294967168 }
 0x1c1 PF: > { %p21_p4 = scmp.ge.s32.totalorder %s1121_s25, 4   ;;  %s1311_s21 = smov %s1048_s22 }
 0x1c2   : > { %s1312_s22 = smov %s1052_s23  ;;  %s1313_s23 = smov %s1131_s28 }
 0x1c3   : > { %s1314_s24 = smov %s1121_s25  ;;  %23 = sbr.rel (!%p21_p4) target bundleno = 7 (0x7), region = 121 }
 0x1c8   :  { %597 = vsyncpa [#allocation4], 1 }
 0x1c9   :  { %599 = vsyncpa [#allocation4 + $0x1], 1 }
 0x1ca   :  { %600 = vsyncpa [#allocation7], 1 }
 0x1cb   :  { %602 = vsyncpa [#allocation7 + $0x1], 1 }
 0x1cc   :  { %603 = vsyncpa [#allocation10], 1 }
 0x1cd   :  { %605 = vsyncpa [#allocation10 + $0x1], 1 }
 0x1ce   :  { %606 = vsyncpa [#allocation5], 1 }
 0x1cf   :  { %608 = vsyncpa [#allocation5 + $0x1], 1 }

</bundles_post_ra>
